<compile_context>
chip_gen: v7x
topology: tpu7x:2x2x1
jax: 0.10.0
libtpu: 0.0.40
codegen_flags: <defaults>
</compile_context>

<pallas_src>
import functools

import jax
import jax.numpy as jnp
from jax.experimental import pallas as pl
from jax.experimental.pallas import tpu as pltpu


def _round_up(n: int, m: int) -> int:
    return ((n + m - 1) // m) * m


def _simple_attention_kernel(x_ref, wq_ref, wc_ref, bc_ref, out_ref, a_ref):
    # x_ref  : (block_b, S, D)   -- a block of samples
    # wq_ref : (1, 1, D)         -- q.weight as a broadcastable row (resident)
    # wc_ref : (D, dimout)       -- classifier.weight^T              (resident)
    # bc_ref : (1, dimout)       -- classifier.bias                  (resident)
    # out_ref: (block_b, dimout) -- logits (lane-major)
    # a_ref  : (block_b, S)      -- attention weights (lane-major)
    x = x_ref[...]                                                    # (bb, S, D)

    # e = q(x): VPU multiply + XLU lane reduction; keeps the MXU off the
    # per-sample serial chain (the old (S,32)@(32,1) matvec was pure MXU latency).
    e = jnp.sum(x * wq_ref[...], axis=-1)                             # (bb, S)

    # exact-zero score -> padding row -> -inf before softmax (module semantics).
    e = jnp.where(e == 0.0, jnp.full_like(e, -jnp.inf), e)

    # numerically-stable softmax over the sequence axis (last axis, lane-major).
    m = jnp.max(e, axis=-1, keepdims=True)                            # (bb, 1)
    p = jnp.exp(e - m)                                                # (bb, S)
    denom = jnp.sum(p, axis=-1, keepdims=True)                        # (bb, 1)
    a = p * pl.reciprocal(denom, approx=True)                         # (bb, S)

    # c = sum_s a[s] * x[s]  -> (bb, D)
    c = jnp.sum(a[:, :, None] * x, axis=1)                            # (bb, D)

    # classifier for the whole block: ONE (bb, D) @ (D, dimout) MXU matmul.
    out_ref[...] = (
        jnp.dot(c, wc_ref[...], preferred_element_type=jnp.float32) + bc_ref[...]
    )
    a_ref[...] = a


def prepare_params(wq, wc, bc):
    """One-time parameter prep, hoisted out of the hot path."""
    dimout, D = wc.shape
    wq_row = wq.reshape(1, 1, D).astype(jnp.float32)      # (1, 1, D)
    wc_t = wc.T.astype(jnp.float32)                       # (D, dimout)
    bc_row = bc.reshape(1, dimout).astype(jnp.float32)    # (1, dimout)
    return wq_row, wc_t, bc_row


@functools.partial(jax.jit, static_argnames=("block_b",))
def simple_attention_batched(xb, wq_row, wc_t, bc_row, *, block_b=128):
    """Batched hot path: xb (B, S, D) -> (logits (B, dimout), a (B, S))."""
    B, S, D = xb.shape
    dimout = wc_t.shape[1]
    xb = xb.astype(jnp.float32)

    # Block must be a multiple of 8 (sublane constraint on the 2-D outputs).
    block_b = min(_round_up(block_b, 8), _round_up(B, 8))
    B_pad = _round_up(B, block_b)
    if B_pad != B:
        # Pad by replicating sample 0 (avoids NaN from all-masked padded rows);
        # padded outputs are sliced off below.
        fill = jnp.broadcast_to(xb[:1], (B_pad - B, S, D))
        xb = jnp.concatenate([xb, fill], axis=0)

    logits, a = pl.pallas_call(
        _simple_attention_kernel,
        out_shape=(
            jax.ShapeDtypeStruct((B_pad, dimout), jnp.float32),
            jax.ShapeDtypeStruct((B_pad, S), jnp.float32),
        ),
        grid_spec=pltpu.PrefetchScalarGridSpec(
            num_scalar_prefetch=0,
            grid=(B_pad // block_b,),
            in_specs=[
                pl.BlockSpec((block_b, S, D), lambda b: (b, 0, 0)),   # streamed
                pl.BlockSpec((1, 1, D), lambda b: (0, 0, 0)),         # resident
                pl.BlockSpec((D, dimout), lambda b: (0, 0)),          # resident
                pl.BlockSpec((1, dimout), lambda b: (0, 0)),          # resident
            ],
            out_specs=(
                pl.BlockSpec((block_b, dimout), lambda b: (b, 0)),
                pl.BlockSpec((block_b, S), lambda b: (b, 0)),
            ),
        ),
        compiler_params=pltpu.CompilerParams(
            dimension_semantics=("parallel",),   # batch blocks across TCs (v7x)
        ),
    )(xb, wq_row, wc_t, bc_row)

    return logits[:B], a[:B]


def simple_attention(x, wq, wc, bc):
    """Module-faithful forward: consumes x[0] (S, D); returns (logits (dimout,), a (S, 1))."""
    params = prepare_params(wq, wc, bc)      # hoist to init in real use
    xb = x[0][None]                          # (1, S, D)  -- matches `x[0]`
    logits, a = simple_attention_batched(xb, *params)
    return logits[0], a[0][:, None]          # a back to torch's (S, 1)


def _reference_single(x, wq, wc, bc):
    x0 = x[0]
    e = x0 @ wq.T
    e = jnp.where(e == 0.0, -jnp.inf, e)
    a = jax.nn.softmax(e, axis=0)
    c = jnp.sum(a * x0, axis=0)
    return c @ wc.T + bc, a


def _reference_batched(xb, wq, wc, bc):
    e = jnp.einsum("bsd,od->bso", xb, wq)[..., 0]        # (B, S)
    e = jnp.where(e == 0.0, -jnp.inf, e)
    a = jax.nn.softmax(e, axis=-1)
    c = jnp.einsum("bs,bsd->bd", a, xb)
    return c @ wc.T + bc, a


if __name__ == "__main__":
    key = jax.random.PRNGKey(0)
    N, S, D, dimout = 2, 8, 32, 5          # module-sized shapes
    B = 64                                 # batched-throughput demo

    kx, kq, kw, kb, kbx = jax.random.split(key, 5)
    x = jax.random.normal(kx, (N, S, D), dtype=jnp.float32)

    bound = 1.0 / float(D) ** 0.5          # PyTorch-Linear-style uniform bounds
    wq = jax.random.uniform(kq, (1, D), jnp.float32, -bound, bound)
    wc = jax.random.uniform(kw, (dimout, D), jnp.float32, -bound, bound)
    bc = jax.random.uniform(kb, (dimout,), jnp.float32, -bound, bound)

    # --- module-faithful single-sample path (exactly SimpleAttention.forward) ---
    logits, a = simple_attention(x, wq, wc, bc)
    jax.block_until_ready((logits, a))
    ref_logits, ref_a = _reference_single(x, wq, wc, bc)
    assert logits.shape == (dimout,) and a.shape == (S, 1)
    # approx reciprocal in the softmax => relaxed tolerances (documented above).
    assert jnp.allclose(logits, ref_logits, atol=2e-3, rtol=2e-3)
    assert jnp.allclose(a, ref_a, atol=2e-3, rtol=2e-3)

    # --- batched hot path: params prepared once, one gridded pallas_call ---
    xb = jax.random.normal(kbx, (B, S, D), dtype=jnp.float32)
    xb = xb.at[:, -2:, :].set(0.0)          # zero rows exercise the `== 0` mask
    params = prepare_params(wq, wc, bc)
    blogits, ba = simple_attention_batched(xb, *params, block_b=16)
    jax.block_until_ready((blogits, ba))
    ref_bl, ref_ba = _reference_batched(xb, wq, wc, bc)
    assert blogits.shape == (B, dimout) and ba.shape == (B, S)
    assert jnp.allclose(blogits, ref_bl, atol=2e-3, rtol=2e-3)
    assert jnp.allclose(ba, ref_ba, atol=2e-3, rtol=2e-3)
    assert jnp.max(jnp.abs(ba[:, -2:])) < 1e-6   # masked rows get ~zero weight

    print("KERNEL_OK")
</pallas_src>

<mosaic_0001>
module attributes {stable_mosaic.version = 11 : i64} {
  func.func @_simple_attention_kernel(%arg0: i32, %arg1: memref<8x8x32xf32, #tpu.memory_space<vmem>>, %arg2: memref<1x1x32xf32, #tpu.memory_space<vmem>>, %arg3: memref<32x5xf32, #tpu.memory_space<vmem>>, %arg4: memref<1x5xf32, #tpu.memory_space<vmem>>, %arg5: memref<8x5xf32, #tpu.memory_space<vmem>>, %arg6: memref<8x8xf32, #tpu.memory_space<vmem>>) attributes {dimension_semantics = [#tpu.dimension_semantics<parallel>], iteration_bounds = array<i64: 1>, scalar_prefetch = 0 : i64, scratch_operands = 0 : i64, tpu.core_type = #tpu.core_type<tc>, window_params = [{transform_indices = @transform_0, window_bounds = array<i64: 8, 8, 32>}, {pipeline_mode = #tpu.pipeline_mode<synchronous>, transform_indices = @transform_1, window_bounds = array<i64: 1, 1, 32>}, {pipeline_mode = #tpu.pipeline_mode<synchronous>, transform_indices = @transform_2, window_bounds = array<i64: 32, 5>}, {pipeline_mode = #tpu.pipeline_mode<synchronous>, transform_indices = @transform_3, window_bounds = array<i64: 1, 5>}, {transform_indices = @transform_4, window_bounds = array<i64: 8, 5>}, {transform_indices = @transform_5, window_bounds = array<i64: 8, 8>}]} {
    %c0 = arith.constant 0 : index
    %c0_0 = arith.constant 0 : index
    %c0_1 = arith.constant 0 : index
    %0 = vector.load %arg1[%c0, %c0_0, %c0_1] : memref<8x8x32xf32, #tpu.memory_space<vmem>>, vector<8x8x32xf32>
    %c0_2 = arith.constant 0 : index
    %c0_3 = arith.constant 0 : index
    %c0_4 = arith.constant 0 : index
    %1 = vector.load %arg2[%c0_2, %c0_3, %c0_4] : memref<1x1x32xf32, #tpu.memory_space<vmem>>, vector<1x1x32xf32>
    %2 = vector.broadcast %1 : vector<1x1x32xf32> to vector<8x8x32xf32>
    %3 = arith.mulf %0, %2 : vector<8x8x32xf32>
    %cst = arith.constant dense<0.000000e+00> : vector<8x8xf32>
    %4 = vector.multi_reduction <add>, %3, %cst [2] : vector<8x8x32xf32> to vector<8x8xf32>
    %cst_5 = arith.constant 0.000000e+00 : f32
    %5 = vector.broadcast %cst_5 : f32 to vector<8x8xf32>
    %6 = arith.cmpf oeq, %4, %5 : vector<8x8xf32>
    %cst_6 = arith.constant 0xFF800000 : f32
    %7 = vector.broadcast %cst_6 : f32 to vector<8x8xf32>
    %8 = arith.select %6, %7, %4 : vector<8x8xi1>, vector<8x8xf32>
    %cst_7 = arith.constant dense<0xFF800000> : vector<8xf32>
    %9 = vector.multi_reduction <maximumf>, %8, %cst_7 [1] : vector<8x8xf32> to vector<8xf32>
    %10 = vector.shape_cast %9 : vector<8xf32> to vector<8x1xf32>
    %11 = vector.broadcast %10 : vector<8x1xf32> to vector<8x8xf32>
    %12 = arith.subf %8, %11 : vector<8x8xf32>
    %13 = math.exp %12 : vector<8x8xf32>
    %cst_8 = arith.constant dense<0.000000e+00> : vector<8xf32>
    %14 = vector.multi_reduction <add>, %13, %cst_8 [1] : vector<8x8xf32> to vector<8xf32>
    %15 = vector.shape_cast %14 : vector<8xf32> to vector<8x1xf32>
    %16 = tpu.reciprocal %15 {approx = true} : vector<8x1xf32> -> vector<8x1xf32>
    %17 = vector.broadcast %16 : vector<8x1xf32> to vector<8x8xf32>
    %18 = arith.mulf %13, %17 : vector<8x8xf32>
    %19 = vector.shape_cast %18 : vector<8x8xf32> to vector<8x8x1xf32>
    %20 = vector.broadcast %19 : vector<8x8x1xf32> to vector<8x8x32xf32>
    %21 = arith.mulf %20, %0 : vector<8x8x32xf32>
    %cst_9 = arith.constant dense<0.000000e+00> : vector<8x32xf32>
    %22 = vector.multi_reduction <add>, %21, %cst_9 [1] : vector<8x8x32xf32> to vector<8x32xf32>
    %c0_10 = arith.constant 0 : index
    %c0_11 = arith.constant 0 : index
    %23 = vector.load %arg3[%c0_10, %c0_11] : memref<32x5xf32, #tpu.memory_space<vmem>>, vector<32x5xf32>
    %cst_12 = arith.constant dense<0.000000e+00> : vector<8x5xf32>
    %24 = tpu.matmul %22, %23, %cst_12 {dimension_numbers = #tpu.dot_dimension_numbers<[1], [0], [0], [1], [0, 0, 1, 1], [], []>} : vector<8x32xf32>, vector<32x5xf32>, vector<8x5xf32> -> vector<8x5xf32>
    %c0_13 = arith.constant 0 : index
    %c0_14 = arith.constant 0 : index
    %25 = vector.load %arg4[%c0_13, %c0_14] : memref<1x5xf32, #tpu.memory_space<vmem>>, vector<1x5xf32>
    %26 = vector.broadcast %25 : vector<1x5xf32> to vector<8x5xf32>
    %27 = arith.addf %24, %26 : vector<8x5xf32>
    %c0_15 = arith.constant 0 : index
    %c0_16 = arith.constant 0 : index
    %28 = vector.load %arg5[%c0_15, %c0_16] : memref<8x5xf32, #tpu.memory_space<vmem>>, vector<8x5xf32>
    tpu.vector_store %arg5[%c0_15, %c0_16], %27 {strides = array<i32>} : memref<8x5xf32, #tpu.memory_space<vmem>>, vector<8x5xf32>,
    %c0_17 = arith.constant 0 : index
    %c0_18 = arith.constant 0 : index
    %29 = vector.load %arg6[%c0_17, %c0_18] : memref<8x8xf32, #tpu.memory_space<vmem>>, vector<8x8xf32>
    tpu.vector_store %arg6[%c0_17, %c0_18], %18 {strides = array<i32>} : memref<8x8xf32, #tpu.memory_space<vmem>>, vector<8x8xf32>,
    return
  }
  func.func @transform_0(%arg0: i32) -> (i32, i32, i32) {
    %c0_i32 = arith.constant 0 : i32
    %c0_i32_0 = arith.constant 0 : i32
    %c0_i32_1 = arith.constant 0 : i32
    return %arg0, %c0_i32, %c0_i32_0 : i32, i32, i32
  }
  func.func @transform_1(%arg0: i32) -> (i32, i32, i32) {
    %c0_i32 = arith.constant 0 : i32
    %c0_i32_0 = arith.constant 0 : i32
    %c0_i32_1 = arith.constant 0 : i32
    %c0_i32_2 = arith.constant 0 : i32
    return %c0_i32, %c0_i32_0, %c0_i32_1 : i32, i32, i32
  }
  func.func @transform_2(%arg0: i32) -> (i32, i32) {
    %c0_i32 = arith.constant 0 : i32
    %c0_i32_0 = arith.constant 0 : i32
    %c0_i32_1 = arith.constant 0 : i32
    return %c0_i32, %c0_i32_0 : i32, i32
  }
  func.func @transform_3(%arg0: i32) -> (i32, i32) {
    %c0_i32 = arith.constant 0 : i32
    %c0_i32_0 = arith.constant 0 : i32
    %c0_i32_1 = arith.constant 0 : i32
    return %c0_i32, %c0_i32_0 : i32, i32
  }
  func.func @transform_4(%arg0: i32) -> (i32, i32) {
    %c0_i32 = arith.constant 0 : i32
    %c0_i32_0 = arith.constant 0 : i32
    return %arg0, %c0_i32 : i32, i32
  }
  func.func @transform_5(%arg0: i32) -> (i32, i32) {
    %c0_i32 = arith.constant 0 : i32
    %c0_i32_0 = arith.constant 0 : i32
    return %arg0, %c0_i32 : i32, i32
  }
}

</mosaic_0001>

<bundles_post_ra>
// kernel: simple_attention_batched.1
= control target key start
LH: loop header
LB: loop body
LE: loop exit
PB: predicated region body
PF: predicated region fallthrough
CT: control target
= control target key end

     0   :  { %vm42_vm0 = vcmask 261120   ;;  %v91_v25 = vlaneseq  ;;  %vm125_vm5 = vcmask 1041409   ;;  %vm127_vm6 = vcmask 1042434   ;;  %s879_s0 = inlined_call_operand.vmem [shape: f32[8,8,32], index: 0, kind: input, shape index: {}]   ;;  %s880_s1 = inlined_call_operand.vmem [shape: f32[1,1,32], index: 1, kind: input, shape index: {}]   ;;  %s881_s2 = inlined_call_operand.vmem [shape: f32[32,5], index: 2, kind: input, shape index: {}]   ;;  %s882_s5 = inlined_call_operand.vmem [shape: f32[8,8], index: 5, kind: output, shape index: {1}]   ;;  %s883_s3 = inlined_call_operand.vmem [shape: f32[1,5], index: 3, kind: input, shape index: {}]   ;;  %s884_s4 = inlined_call_operand.vmem [shape: f32[8,5], index: 4, kind: output, shape index: {0}]  }
   0x1   :  { %v673_v0 = vld [vmem:[%s879_s0 + $0x10] sm:$0xff]  ;;  %v587_v1 = vld [vmem:[%s880_s1] ss:$0 sm:$0xff]  ;;  %v688_v5 = vld [vmem:[%s879_s0 + $0x18] sm:$0xff]  ;;  %vm129_vm7 = vcmask 1043459   ;;  %vm131_vm10 = vcmask 1044484  }
   0x2   :  { %v681_v2 = vld [vmem:[%s879_s0] sm:$0xff]  ;;  %v36_v3 = vmul.f32 %v587_v1, %v673_v0  ;;  %v693_v6 = vld [vmem:[%s879_s0 + $0x8] sm:$0xff]  ;;  %v37_v7 = vmul.f32 %v587_v1, %v688_v5  ;;  %v716_v17 = vld [vmem:[%s879_s0 + $0x38] sm:$0xff]  ;;  %v92_v26 = vand.u32 127, %v91_v25  ;;  %v729_v27 = vshrl.u32 %v91_v25, 7 }
   0x3   :  { %v34_v4 = vmul.f32 %v587_v1, %v681_v2  ;;  %v35_v8 = vmul.f32 %v587_v1, %v693_v6  ;;  %v700_v9 = vld [vmem:[%s879_s0 + $0x28] sm:$0xff]  ;;  %v705_v10 = vld [vmem:[%s879_s0 + $0x20] sm:$0xff]  ;;  %v721_v18 = vld [vmem:[%s879_s0 + $0x30] sm:$0xff]  ;;  %v41_v21 = vmul.f32 %v587_v1, %v716_v17  ;;  %vm133_vm13 = vcmask 1045509  }
   0x4   :  { %v49_v11 = vsel %vm42_vm0, %v36_v3, 0.0  ;;  %v52_v13 = vsel %vm42_vm0, %v37_v7, 0.0  ;;  %v39_v15 = vmul.f32 %v587_v1, %v700_v9  ;;  %v38_v16 = vmul.f32 %v587_v1, %v705_v10 }
   0x5   :  { %v43_v12 = vsel %vm42_vm0, %v34_v4, 0.0  ;;  %50 = vadd.xlane.f32.xlu1 %v49_v11  ;;  %v46_v14 = vsel %vm42_vm0, %v35_v8, 0.0  ;;  %v40_v22 = vmul.f32 %v587_v1, %v721_v18  ;;  %v64_v23 = vsel %vm42_vm0, %v41_v21, 0.0 }
   0x6   :  { %44 = vadd.xlane.f32.xlu0 %v43_v12  ;;  %v58_v19 = vsel %vm42_vm0, %v39_v15, 0.0  ;;  %v55_v20 = vsel %vm42_vm0, %v38_v16, 0.0  ;;  %v732_v30 = vsub.s32 %v92_v26, %v729_v27  ;;  %vm135_vm14 = vcmask 1046534  }
   0x7   :  { %v61_v24 = vsel %vm42_vm0, %v40_v22, 0.0  ;;  %vm137_vm15 = vcmask 1047559   ;;  %v636_v61 = vmov 0   ;;  %v147_v62 = vsub.s32 0, %v729_v27 }
   0x8   :  { %617 = vset.pattern.permute.xlu0 %v636_v61  ;;  %616 = vset.pattern.permute.xlu1 %v636_v61  ;;  %v151_v63 = vsub.s32 1, %v729_v27  ;;  %v155_v1 = vsub.s32 2, %v729_v27  ;;  %v159_v3 = vsub.s32 3, %v729_v27  ;;  %v163_v12 = vsub.s32 4, %v729_v27 }
   0x9   :  { %53 = vadd.xlane.f32.xlu1 %v52_v13  ;;  %v167_v21 = vsub.s32 5, %v729_v27  ;;  %v171_v25 = vsub.s32 6, %v729_v27 }
   0xa   :  { %47 = vadd.xlane.f32.xlu0 %v46_v14 }
   0xd   :  { %59 = vadd.xlane.f32.xlu1 %v58_v19 }
   0xe   :  { %56 = vadd.xlane.f32.xlu0 %v55_v20 }
  0x11   :  { %65 = vadd.xlane.f32.xlu1 %v64_v23 }
  0x12   :  { %62 = vadd.xlane.f32.xlu0 %v61_v24 }
  0x92   :  { %v51_v28 = vpop.xlane.xlu1 %50 }
  0x93   :  { %v45_v29 = vpop.xlane.xlu0 %44  ;;  %vm69_vm2 = vcmp.eq.f32.partialorder %v51_v28, 0.0 }
  0x94   :  { %vm67_vm1 = vcmp.eq.f32.partialorder %v45_v29, 0.0  ;;  %v734_v34 = vsel %vm69_vm2, -inf, %v51_v28  ;;  %vm638_vm2 = vmmov 0  }
  0x95   :  { %v75_v31 = vsel %vm67_vm1, -inf, %v45_v29  ;;  %v104_v39 = vrot.slane %v734_v34, %v732_v30  ;;  %vm140_vm1 = vcmask 64512  }
  0x96   :  { %v54_v32 = vpop.xlane.xlu1 %53  ;;  %v96_v37 = vrot.slane %v75_v31, %v732_v30 }
  0x97   :  { %v48_v33 = vpop.xlane.xlu0 %47  ;;  %vm70_vm3 = vcmp.eq.f32.partialorder %v54_v32, 0.0 }
  0x98   :  { %vm68_vm4 = vcmp.eq.f32.partialorder %v48_v33, 0.0  ;;  %v736_v35 = vsel %vm70_vm3, -inf, %v54_v32  ;;  %vm536_vm3 = vcmask 39936  }
  0x99   :  { %v76_v36 = vsel %vm68_vm4, -inf, %v48_v33  ;;  %v108_v42 = vrot.slane %v736_v35, %v732_v30 }
  0x9a   :  { %v100_v38 = vrot.slane %v76_v36, %v732_v30  ;;  %v60_v40 = vpop.xlane.xlu1 %59 }
  0x9b   :  { %v57_v41 = vpop.xlane.xlu0 %56  ;;  %vm72_vm8 = vcmp.eq.f32.partialorder %v60_v40, 0.0 }
  0x9c   :  { %v126_v43 = vsel %vm125_vm5, %v100_v38, %v96_v37  ;;  %vm71_vm9 = vcmp.eq.f32.partialorder %v57_v41, 0.0  ;;  %v746_v45 = vsel %vm72_vm8, -inf, %v60_v40 }
  0x9d   :  { %v128_v44 = vsel %vm127_vm6, %v104_v39, %v126_v43  ;;  %v79_v46 = vsel %vm71_vm9, -inf, %v57_v41  ;;  %v116_v49 = vrot.slane %v746_v45, %v732_v30 }
  0x9e   :  { %v130_v47 = vsel %vm129_vm7, %v108_v42, %v128_v44  ;;  %v112_v48 = vrot.slane %v79_v46, %v732_v30  ;;  %v66_v50 = vpop.xlane.xlu1 %65 }
  0x9f   :  { %v63_v51 = vpop.xlane.xlu0 %62  ;;  %vm74_vm11 = vcmp.eq.f32.partialorder %v66_v50, 0.0 }
  0xa0   :  { %v132_v52 = vsel %vm131_vm10, %v112_v48, %v130_v47  ;;  %vm73_vm12 = vcmp.eq.f32.partialorder %v63_v51, 0.0  ;;  %v82_v53 = vsel %vm74_vm11, -inf, %v66_v50 }
  0xa1   :  { %v81_v54 = vsel %vm73_vm12, -inf, %v63_v51  ;;  %v124_v55 = vrot.slane %v82_v53, %v732_v30  ;;  %v134_v57 = vsel %vm133_vm13, %v116_v49, %v132_v52 }
  0xa2   :  { %v120_v56 = vrot.slane %v81_v54, %v732_v30 }
  0xa4   :  { %v136_v58 = vsel %vm135_vm14, %v120_v56, %v134_v57 }
  0xa5   :  { %v138_v59 = vsel %vm137_vm15, %v124_v55, %v136_v58 }
  0xa6   :  { %v141_v60 = vsel %vm140_vm1, %v138_v59, -inf }
  0xa7   :  { %142 = vmax.xlane.f32.xlu0 %v141_v60 }
 0x134   :  { %v143_v4 = vpop.xlane.xlu0 %142 }
 0x135   :  { %v148_v7 = vrot.slane %v143_v4, %v147_v62  ;;  %v152_v8 = vrot.slane %v143_v4, %v151_v63  ;;  %v156_v11 = vrot.slane %v143_v4, %v155_v1  ;;  %v160_v13 = vrot.slane %v143_v4, %v159_v3 }
 0x136   :  { %v164_v22 = vrot.slane %v143_v4, %v163_v12  ;;  %v168_v26 = vrot.slane %v143_v4, %v167_v21  ;;  %v172_v32 = vrot.slane %v143_v4, %v171_v25 }
 0x137   :  { %v185_v14 = vsub.f32 %v75_v31, %v148_v7  ;;  %v186_v15 = vsub.f32 %v76_v36, %v152_v8  ;;  %v187_v16 = vsub.f32 %v734_v34, %v156_v11  ;;  %v188_v23 = vsub.f32 %v736_v35, %v160_v13 }
 0x138   :  { %v189_v28 = vsub.f32 %v79_v46, %v164_v22  ;;  %v175_v31 = vsub.s32 7, %v729_v27  ;;  %v190_v33 = vsub.f32 %v746_v45, %v168_v26  ;;  %v191_v38 = vsub.f32 %v81_v54, %v172_v32  ;;  %v441_v27 = vld [vmem:[%s881_s2 + $0x18] sm:$0xff] }
 0x139   :  { %v193_v19 = vmul.f32 1.442695, %v185_v14  ;;  %v195_v20 = vmul.f32 1.442695, %v186_v15  ;;  %v197_v24 = vmul.f32 1.442695, %v187_v16 }
 0x13a   :  { %v199_v29 = vmul.f32 1.442695, %v188_v23  ;;  %v201_v34 = vmul.f32 1.442695, %v189_v28  ;;  %v176_v37 = vrot.slane %v143_v4, %v175_v31  ;;  %v203_v39 = vmul.f32 1.442695, %v190_v33 }
 0x13b   :  { %618 = vpow2.f32 %v193_v19  ;;  %v205_v42 = vmul.f32 1.442695, %v191_v38 }
 0x13c   :  { %620 = vpow2.f32 %v195_v20  ;;  %v192_v41 = vsub.f32 %v82_v53, %v176_v37 }
 0x13d   :  { %622 = vpow2.f32 %v197_v24 }
 0x13e   :  { %624 = vpow2.f32 %v199_v29  ;;  %v207_v44 = vmul.f32 1.442695, %v192_v41  ;;  %v637_v41 = vmov 0.0|0.0  }
 0x13f   :  { %626 = vpow2.f32 %v201_v34  ;;  %606 = vmatprep.subr.bf16.mxu0 %v637_v41 }
 0x140   :  { %628 = vpow2.f32 %v203_v39 }
 0x141   :  { %630 = vpow2.f32 %v205_v42 }
 0x142   :  { %632 = vpow2.f32 %v207_v44 }
 0x145   :  { %v619_v35 = vpop.eup %618 }
 0x146   :  { %v621_v36 = vpop.eup %620  ;;  %218 = vperm.xlu1 %616, %v619_v35  }
 0x147   :  { %221 = vperm.xlu0 %617, %v621_v36   ;;  %v623_v40 = vpop.eup %622 }
 0x148   :  { %v625_v43 = vpop.eup %624 }
 0x149   :  { %v627_v45 = vpop.eup %626 }
 0x14a   :  { %224 = vperm.xlu1 %616, %v623_v40   ;;  %v629_v46 = vpop.eup %628 }
 0x14b   :  { %v631_v47 = vpop.eup %630 }
 0x14c   :  { %v633_v48 = vpop.eup %632 }
 0x14e   :  { %227 = vperm.xlu1 %616, %v625_v43  }
 0x152   :  { %230 = vperm.xlu1 %616, %v627_v45  }
 0x156   :  { %233 = vperm.xlu1 %616, %v629_v46  }
 0x15a   :  { %236 = vperm.xlu1 %616, %v631_v47  }
 0x15e   :  { %239 = vperm.xlu1 %616, %v633_v48  }
 0x1c5   :  { %v219_v49 = vpop.permute.xlu1 %218 }
 0x1c6   :  { %v222_v53 = vpop.permute.xlu0 %221  ;;  %v244_v56 = vrot.slane %v219_v49, %v732_v30 }
 0x1c7   :  { %v248_v55 = vrot.slane %v222_v53, %v732_v30 }
 0x1c9   :  { %v225_v50 = vpop.permute.xlu1 %224  ;;  %v273_v61 = vsel %vm125_vm5, %v248_v55, %v244_v56 }
 0x1ca   :  { %v252_v57 = vrot.slane %v225_v50, %v732_v30 }
 0x1cc   :  { %v274_v7 = vsel %vm127_vm6, %v252_v57, %v273_v61 }
 0x1cd   :  { %v228_v51 = vpop.permute.xlu1 %227 }
 0x1ce   :  { %v256_v58 = vrot.slane %v228_v51, %v732_v30 }
 0x1d0   :  { %v275_v11 = vsel %vm129_vm7, %v256_v58, %v274_v7 }
 0x1d1   :  { %v231_v52 = vpop.permute.xlu1 %230 }
 0x1d2   :  { %v260_v59 = vrot.slane %v231_v52, %v732_v30 }
 0x1d4   :  { %v276_v13 = vsel %vm131_vm10, %v260_v59, %v275_v11 }
 0x1d5   :  { %v234_v54 = vpop.permute.xlu1 %233 }
 0x1d6   :  { %v264_v4 = vrot.slane %v234_v54, %v732_v30 }
 0x1d8   :  { %v277_v15 = vsel %vm133_vm13, %v264_v4, %v276_v13 }
 0x1d9   :  { %v237_v60 = vpop.permute.xlu1 %236 }
 0x1da   :  { %v268_v8 = vrot.slane %v237_v60, %v732_v30 }
 0x1dc   :  { %v278_v19 = vsel %vm135_vm14, %v268_v8, %v277_v15 }
 0x1dd   :  { %v240_v14 = vpop.permute.xlu1 %239 }
 0x1de   :  { %v272_v16 = vrot.slane %v240_v14, %v732_v30 }
 0x1e0   :  { %v279_v20 = vsel %vm137_vm15, %v272_v16, %v278_v19 }
 0x1e1   :  { %v281_v22 = vsel %vm140_vm1, %v279_v20, 0.0 }
 0x1e2   :  { %282 = vadd.xlane.f32.xlu1 %v281_v22 }
 0x26f   :  { %v283_v23 = vpop.xlane.xlu1 %282 }
 0x270   :  { %634 = vrcp.f32 %v283_v23 }
 0x27a   :  { %v635_v24 = vpop.eup %634 }
 0x27b   :  { %v289_v26 = vrot.slane %v635_v24, %v147_v62  ;;  %v293_v29 = vrot.slane %v635_v24, %v151_v63  ;;  %v297_v33 = vrot.slane %v635_v24, %v155_v1  ;;  %v301_v37 = vrot.slane %v635_v24, %v159_v3 }
 0x27c   :  { %v305_v39 = vrot.slane %v635_v24, %v163_v12  ;;  %v309_v63 = vrot.slane %v635_v24, %v167_v21  ;;  %v313_v1 = vrot.slane %v635_v24, %v171_v25  ;;  %v317_v3 = vrot.slane %v635_v24, %v175_v31  ;;  %v438_v12 = vld [vmem:[%s881_s2] sm:$0xff]  ;;  %v439_v21 = vld [vmem:[%s881_s2 + $0x8] sm:$0xff]  ;;  %v440_v25 = vld [vmem:[%s881_s2 + $0x10] sm:$0xff] }
 0x27d   :  { %v326_v28 = vmul.f32 %v619_v35, %v289_v26  ;;  %v327_v32 = vmul.f32 %v621_v36, %v293_v29  ;;  %v328_v34 = vmul.f32 %v623_v40, %v297_v33  ;;  %v329_v38 = vmul.f32 %v625_v43, %v301_v37 }
 0x27e   :  { %v330_v62 = vmul.f32 %v627_v45, %v305_v39  ;;  %v331_v35 = vmul.f32 %v629_v46, %v309_v63  ;;  %v332_v36 = vmul.f32 %v631_v47, %v313_v1  ;;  %v333_v40 = vmul.f32 %v633_v48, %v317_v3 }
 0x27f   :  { %336 = vperm.xlu0 %617, %v326_v28   ;;  %v607_v42 = vpack.c.bf16 %v439_v21, %v438_v12  ;;  %v639_v31 = vmov 0.0   ;;  %v610_v43 = vpack.c.bf16 %v441_v27, %v440_v25 }
 0x280   :  { %603 = vmatprep.mubr.msk.f32.mxu0 %vm638_vm2, %v639_v31 }
 0x281   :  { %608 = vmatpush3.bf16.msra.mxu0 %v607_v42 }
 0x282   :  { %609 = vmatprep.subr.bf16.mxu0 %v637_v41 }
 0x283   :  { %341 = vperm.xlu0 %617, %v327_v32  }
 0x285   :  { %611 = vmatpush3.bf16.msra.mxu0 %v610_v43 }
 0x287   :  { %346 = vperm.xlu0 %617, %v328_v34  }
 0x28b   :  { %351 = vperm.xlu0 %617, %v329_v38  }
 0x28f   :  { %356 = vperm.xlu0 %617, %v330_v62  }
 0x293   :  { %361 = vperm.xlu0 %617, %v331_v35  }
 0x297   :  { %366 = vperm.xlu0 %617, %v332_v36  }
 0x29b   :  { %371 = vperm.xlu0 %617, %v333_v40  }
 0x2fe   :  { %v337_v44 = vpop.permute.xlu0 %336 }
 0x2ff   :  { %v374_v47 = vmul.f32 %v337_v44, %v681_v2  ;;  %v541_v14 = vrot.slane %v337_v44, %v732_v30 }
 0x301   :  { %v382_v51 = vsel %vm42_vm0, %v374_v47, 0.0 }
 0x302   :  { %v342_v45 = vpop.permute.xlu0 %341  ;;  %v383_v56 = vrot.slane %v382_v51, 4 }
 0x303   :  { %v375_v46 = vmul.f32 %v342_v45, %v693_v6  ;;  %v545_v13 = vrot.slane %v342_v45, %v732_v30 }
 0x305   :  { %v389_v50 = vsel %vm42_vm0, %v375_v46, 0.0  ;;  %v570_v32 = vsel %vm125_vm5, %v545_v13, %v541_v14 }
 0x306   :  { %v347_v48 = vpop.permute.xlu0 %346  ;;  %v390_v55 = vrot.slane %v389_v50, 4 }
 0x307   :  { %v376_v49 = vmul.f32 %v347_v48, %v673_v0  ;;  %v384_v0 = vadd.f32 %v383_v56, %v382_v51  ;;  %v549_v16 = vrot.slane %v347_v48, %v732_v30 }
 0x308   :  { %v391_v60 = vadd.f32 %v390_v55, %v389_v50 }
 0x309   :  { %v396_v52 = vsel %vm42_vm0, %v376_v49, 0.0  ;;  %v385_v20 = vrot.slane %v384_v0, 2  ;;  %v571_v38 = vsel %vm127_vm6, %v549_v16, %v570_v32 }
 0x30a   :  { %v352_v53 = vpop.permute.xlu0 %351  ;;  %v397_v57 = vrot.slane %v396_v52, 4  ;;  %v392_v15 = vrot.slane %v391_v60, 2 }
 0x30b   :  { %v377_v54 = vmul.f32 %v352_v53, %v688_v5  ;;  %v553_v22 = vrot.slane %v352_v53, %v732_v30  ;;  %v386_v63 = vadd.f32 %v385_v20, %v384_v0 }
 0x30c   :  { %v398_v61 = vadd.f32 %v397_v57, %v396_v52  ;;  %v393_v37 = vadd.f32 %v392_v15, %v391_v60 }
 0x30d   :  { %v403_v58 = vsel %vm42_vm0, %v377_v54, 0.0  ;;  %v572_v1 = vsel %vm129_vm7, %v553_v22, %v571_v38  ;;  %v387_v49 = vrot.slane %v386_v63, 1 }
 0x30e   :  { %v404_v6 = vrot.slane %v403_v58, 4  ;;  %v357_v59 = vpop.permute.xlu0 %356  ;;  %v394_v31 = vrot.slane %v393_v37, 1 }
 0x30f   :  { %v378_v2 = vmul.f32 %v357_v59, %v705_v10  ;;  %v399_v10 = vrot.slane %v398_v61, 2  ;;  %v557_v26 = vrot.slane %v357_v59, %v732_v30  ;;  %v388_v57 = vadd.f32 %v387_v49, %v386_v63 }
 0x310   :  { %v405_v7 = vadd.f32 %v404_v6, %v403_v58 }
 0x311   :  { %v410_v4 = vsel %vm42_vm0, %v378_v2, 0.0  ;;  %v400_v35 = vadd.f32 %v399_v10, %v398_v61  ;;  %v573_v40 = vsel %vm131_vm10, %v557_v26, %v572_v1 }
 0x312   :  { %v411_v8 = vrot.slane %v410_v4, 4  ;;  %v362_v11 = vpop.permute.xlu0 %361  ;;  %v406_v24 = vrot.slane %v405_v7, 2 }
 0x313   :  { %v379_v5 = vmul.f32 %v362_v11, %v700_v9  ;;  %v561_v33 = vrot.slane %v362_v11, %v732_v30  ;;  %v401_v46 = vrot.slane %v400_v35, 1 }
 0x314   :  { %v412_v19 = vadd.f32 %v411_v8, %v410_v4  ;;  %v407_v3 = vadd.f32 %v406_v24, %v405_v7 }
 0x315   :  { %v417_v23 = vsel %vm42_vm0, %v379_v5, 0.0  ;;  %v402_v56 = vadd.f32 %v401_v46, %v400_v35 }
 0x316   :  { %v418_v28 = vrot.slane %v417_v23, 4  ;;  %v367_v29 = vpop.permute.xlu0 %366  ;;  %v413_v9 = vrot.slane %v412_v19, 2  ;;  %v408_v50 = vrot.slane %v407_v3, 1 }
 0x317   :  { %v380_v34 = vmul.f32 %v367_v29, %v721_v18  ;;  %v565_v62 = vrot.slane %v367_v29, %v732_v30  ;;  %v574_v18 = vsel %vm133_vm13, %v561_v33, %v573_v40 }
 0x318   :  { %v419_v39 = vadd.f32 %v418_v28, %v417_v23  ;;  %v414_v41 = vadd.f32 %v413_v9, %v412_v19  ;;  %v409_v58 = vadd.f32 %v408_v50, %v407_v3  ;;  %v588_v19 = vld [vmem:[%s883_s3] ss:$0 sm:$0xff] }
 0x319   :  { %v424_v36 = vsel %vm42_vm0, %v380_v34, 0.0  ;;  %v575_v45 = vsel %vm135_vm14, %v565_v62, %v574_v18 }
 0x31a   :  { %v420_v12 = vrot.slane %v419_v39, 2  ;;  %v425_v21 = vrot.slane %v424_v36, 4  ;;  %v372_v25 = vpop.permute.xlu0 %371 }
 0x31b   :  { %v381_v42 = vmul.f32 %v372_v25, %v716_v17  ;;  %v569_v27 = vrot.slane %v372_v25, %v732_v30  ;;  %v415_v17 = vrot.slane %v414_v41, 1  ;;  %v395_v30 = vadd.f32 %v394_v31, %v393_v37 }
 0x31c   :  { %v421_v43 = vadd.f32 %v420_v12, %v419_v39  ;;  %v426_v44 = vadd.f32 %v425_v21, %v424_v36 }
 0x31d   :  { %v431_v47 = vsel %vm42_vm0, %v381_v42, 0.0  ;;  %v576_v48 = vsel %vm137_vm15, %v569_v27, %v575_v45  ;;  %v416_v2 = vadd.f32 %v415_v17, %v414_v41  ;;  %v457_v60 = vsel %vm125_vm5, %v395_v30, %v388_v57 }
 0x31e   :  { %v427_v51 = vrot.slane %v426_v44, 2  ;;  %v432_v52 = vrot.slane %v431_v47, 4  ;;  %578 = vst.msk [vmem:[%s882_s5] sm:$0xff] %vm140_vm1, %v576_v48  ;;  %v422_v53 = vrot.slane %v421_v43, 1  ;;  %v458_v4 = vsel %vm127_vm6, %v402_v56, %v457_v60 }
 0x31f   :  { %v459_v11 = vsel %vm129_vm7, %v409_v58, %v458_v4 }
 0x320   :  { %v428_v54 = vadd.f32 %v427_v51, %v426_v44  ;;  %v433_v55 = vadd.f32 %v432_v52, %v431_v47  ;;  %v423_v0 = vadd.f32 %v422_v53, %v421_v43  ;;  %v460_v13 = vsel %vm131_vm10, %v416_v2, %v459_v11 }
 0x322   :  { %v429_v6 = vrot.slane %v428_v54, 1  ;;  %v434_v59 = vrot.slane %v433_v55, 2  ;;  %v461_v14 = vsel %vm133_vm13, %v423_v0, %v460_v13 }
 0x324   :  { %v435_v61 = vadd.f32 %v434_v59, %v433_v55  ;;  %v430_v7 = vadd.f32 %v429_v6, %v428_v54 }
 0x326   :  { %v436_v8 = vrot.slane %v435_v61, 1  ;;  %v462_v15 = vsel %vm135_vm14, %v430_v7, %v461_v14 }
 0x328   :  { %v437_v5 = vadd.f32 %v436_v8, %v435_v61 }
 0x32a   :  { %v463_v16 = vsel %vm137_vm15, %v437_v5, %v462_v15 }
 0x32b   :  { %604 = vmatmul.mubr.msk.f32.vlgmr.msra.gmra.mrb[0].mxu0 %vm42_vm0, %v463_v16 }
 0x3fe   :  { %v532_v20 = vpop.f32.mrb[0].mxu0 }
 0x3ff   :  { %v533_v10 = vadd.f32 %v588_v19, %v532_v20  ;;  %v605_v22 = vpop.f32.mrb[1].mxu0 }
 0x401   :  { %537 = vst.msk [vmem:[%s884_s4] sm:$0xff] %vm536_vm3, %v533_v10 }

</bundles_post_ra>
